<compile_context>
chip_gen: v7x
topology: tpu7x:2x2x1
jax: 0.10.0
libtpu: 0.0.40
codegen_flags: <defaults>
</compile_context>

<pallas_src>
import functools

import jax
import jax.numpy as jnp
from jax.experimental import pallas as pl
from jax.experimental.pallas import tpu as pltpu


def _round_up(x, m):
    return ((x + m - 1) // m) * m


def _cdiv(a, b):
    return (a + b - 1) // b


@functools.lru_cache(maxsize=None)
def _tpu_hw():
    """Returns (vmem_capacity_bytes, tensorcores_per_chip, device_kind)."""
    kind = ""
    try:
        kind = jax.devices()[0].device_kind.lower()
    except Exception:
        kind = ""
    vmem = None
    try:
        vmem = int(pltpu.get_tpu_info().vmem_capacity_bytes)
    except Exception:
        vmem = None
    is_v7 = ("v7" in kind) or ("7x" in kind)
    cores = 2 if is_v7 else 1
    if vmem is None:
        vmem = (64 << 20) if is_v7 else (128 << 20)
    if is_v7:
        vmem = min(vmem, 64 << 20)   # per-TensorCore VMEM on v7x
    return vmem, cores, kind


@functools.lru_cache(maxsize=None)
def _plan(dim, hidden, itemsize, tm_req, th_req):
    """Static tiling plan; idempotent when re-applied to already-padded shapes."""
    vmem_cap, cores, kind = _tpu_hw()
    budget = (vmem_cap * 3) // 4                     # ~96 MiB v5e/v6e, ~48 MiB v7x

    sub = 8 if itemsize >= 4 else 16                 # sublane packing f32 / bf16
    dim_pad = _round_up(dim, 128)
    hidden_pad = _round_up(hidden, 128)

    # Generation-aware row-tile cap (arithmetic intensity vs streamed weights
    # is ~2*tm/itemsize flop/byte; v6e roofline ~650 fl/B, v5e ~240 fl/B).
    if tm_req is not None:
        tm_cap = _round_up(max(int(tm_req), sub), sub)
    elif cores >= 2:                                  # v7x: 2 TCs, 3.2 TB/s HBM
        tm_cap = 256
    elif "v5" in kind:                                # v5e
        tm_cap = 512
    else:                                             # v6e / unknown
        tm_cap = 1024

    def xo_bytes(tm, with_acc):
        b = 2 * itemsize * (2 * tm * dim_pad + dim_pad)      # x + out (dbl-buf) + b2
        if with_acc:
            b += 4 * tm * dim_pad                            # f32 accumulator scratch
        return b

    per_h = 2 * itemsize * (2 * dim_pad + 1)                 # W1 col + W2 row + b1 (dbl-buf)

    # Shrink tm until at least a 128-wide hidden chunk fits the budget.
    while tm_cap > sub and xo_bytes(tm_cap, True) + 128 * per_h > budget:
        tm_cap = max(sub, _round_up(tm_cap // 2, sub))

    if th_req is not None:
        th_target = min(_round_up(max(int(th_req), 128), 128), hidden_pad)
    elif xo_bytes(tm_cap, False) + hidden_pad * per_h <= budget:
        th_target = hidden_pad                               # single-k fast path
    else:
        th_target = (budget - xo_bytes(tm_cap, True)) // per_h
        th_target = max(128, (th_target // 128) * 128)
        th_target = min(th_target, hidden_pad)

    if th_target >= hidden_pad:
        num_k, th_eff = 1, hidden_pad
    else:
        num_k = _cdiv(hidden_pad, th_target)                 # near-divisor chunking
        th_eff = _round_up(_cdiv(hidden_pad, num_k), 128)
    hidden_total = th_eff * num_k

    return dict(dim_pad=dim_pad, hidden_total=hidden_total, th=th_eff, num_k=num_k,
                tm_cap=tm_cap, sub=sub, cores=cores, vmem_cap=vmem_cap)


# ---------------------------------------------------------------------------
# Kernels
# ---------------------------------------------------------------------------
def _ffn_kernel_single(x_ref, w1_ref, b1_ref, w2_ref, b2_ref, o_ref):
    # Whole hidden dim resident: no accumulator, no init/finalize branches.
    h = jnp.dot(x_ref[...], w1_ref[...], preferred_element_type=jnp.float32)
    h = jnp.maximum(h + b1_ref[...].astype(jnp.float32), 0.0)
    acc = jnp.dot(h.astype(w2_ref.dtype), w2_ref[...],
                  preferred_element_type=jnp.float32)
    o_ref[...] = (acc + b2_ref[...].astype(jnp.float32)).astype(o_ref.dtype)


def _ffn_kernel_multi(x_ref, w1_ref, b1_ref, w2_ref, b2_ref, o_ref, acc_ref):
    k = pl.program_id(1)

    @pl.when(k == 0)
    def _():
        # Seed accumulator with b2 (saves a zero-fill and a finalize add).
        acc_ref[...] = jnp.broadcast_to(b2_ref[...].astype(jnp.float32), acc_ref.shape)

    h = jnp.dot(x_ref[...], w1_ref[...], preferred_element_type=jnp.float32)
    h = jnp.maximum(h + b1_ref[...].astype(jnp.float32), 0.0)      # bias + ReLU (VPU)
    acc_ref[...] += jnp.dot(h.astype(w2_ref.dtype), w2_ref[...],
                            preferred_element_type=jnp.float32)

    @pl.when(k == pl.num_programs(1) - 1)
    def _():
        o_ref[...] = acc_ref[...].astype(o_ref.dtype)


# ---------------------------------------------------------------------------
# Wrapper
# ---------------------------------------------------------------------------
@functools.partial(jax.jit, static_argnames=("tm", "th"))
def feed_forward(x, w1, b1, w2, b2, *, tm=None, th=None):
    """x: (..., dim) -> (..., dim), fused MLP forward (dropout = identity)."""
    orig_shape = x.shape
    dim = orig_shape[-1]
    x2d = x.reshape(-1, dim)
    n = x2d.shape[0]

    if x2d.dtype != w1.dtype:
        x2d = x2d.astype(w1.dtype)            # mixed-precision path if weights are bf16
    itemsize = jnp.dtype(w1.dtype).itemsize

    hidden_in = w1.shape[1]                   # may already be padded by prepare_*
    cfg = _plan(dim, hidden_in, itemsize, tm, th)
    dim_pad, hidden_total = cfg["dim_pad"], cfg["hidden_total"]
    th_eff, num_k, sub = cfg["th"], cfg["num_k"], cfg["sub"]

    # Per-call row tile; guarantee >=2 row tiles on multi-TensorCore chips so the
    # "parallel" axis can be megacore-sharded.
    tm_eff = min(cfg["tm_cap"], _round_up(n, sub))
    if cfg["cores"] >= 2 and n > sub:
        tm_eff = min(tm_eff, _round_up(_cdiv(n, 2), sub))
    n_pad = _round_up(n, tm_eff)
    row_tiles = n_pad // tm_eff

    # Pad activations per call; weight pads are zero-width (free) if the params
    # were pre-padded with prepare_feed_forward_params.
    x_p = jnp.pad(x2d, ((0, n_pad - n), (0, dim_pad - dim)))
    w1_p = jnp.pad(w1, ((0, dim_pad - w1.shape[0]), (0, hidden_total - w1.shape[1])))
    b1_p = jnp.pad(jnp.reshape(b1, (1, -1)), ((0, 0), (0, hidden_total - b1.size)))
    w2_p = jnp.pad(w2, ((0, hidden_total - w2.shape[0]), (0, dim_pad - w2.shape[1])))
    b2_p = jnp.pad(jnp.reshape(b2, (1, -1)), ((0, 0), (0, dim_pad - b2.size)))

    # Advisory cost (weights are re-streamed once per row tile) + VMEM budget.
    flops = 4 * n_pad * dim_pad * hidden_total
    weight_bytes = itemsize * (2 * dim_pad * hidden_total + hidden_total + dim_pad)
    bytes_accessed = itemsize * 2 * n_pad * dim_pad + row_tiles * weight_bytes

    tile_bytes = 2 * itemsize * (2 * tm_eff * dim_pad          # x + out (dbl-buffered)
                                 + 2 * dim_pad * th_eff + th_eff   # W1 + W2 chunks + b1
                                 + dim_pad)                    # b2
    vmem_needed = tile_bytes + (4 * tm_eff * dim_pad if num_k > 1 else 0)
    vmem_limit = int(min(max(vmem_needed + (4 << 20), 32 << 20), cfg["vmem_cap"]))

    cost = pl.CostEstimate(flops=flops, transcendentals=0, bytes_accessed=bytes_accessed)

    if num_k == 1:
        out = pl.pallas_call(
            _ffn_kernel_single,
            out_shape=jax.ShapeDtypeStruct((n_pad, dim_pad), x.dtype),
            grid_spec=pltpu.PrefetchScalarGridSpec(
                num_scalar_prefetch=0,
                grid=(row_tiles,),
                in_specs=[
                    pl.BlockSpec((tm_eff, dim_pad), lambda i: (i, 0)),   # x rows
                    pl.BlockSpec((dim_pad, th_eff), lambda i: (0, 0)),   # W1 (full)
                    pl.BlockSpec((1, th_eff), lambda i: (0, 0)),         # b1
                    pl.BlockSpec((th_eff, dim_pad), lambda i: (0, 0)),   # W2 (full)
                    pl.BlockSpec((1, dim_pad), lambda i: (0, 0)),        # b2
                ],
                out_specs=pl.BlockSpec((tm_eff, dim_pad), lambda i: (i, 0)),
            ),
            compiler_params=pltpu.CompilerParams(
                dimension_semantics=("parallel",),
                vmem_limit_bytes=vmem_limit),
            cost_estimate=cost,
        )(x_p, w1_p, b1_p, w2_p, b2_p)
    else:
        out = pl.pallas_call(
            _ffn_kernel_multi,
            out_shape=jax.ShapeDtypeStruct((n_pad, dim_pad), x.dtype),
            grid_spec=pltpu.PrefetchScalarGridSpec(
                num_scalar_prefetch=0,
                grid=(row_tiles, num_k),
                in_specs=[
                    pl.BlockSpec((tm_eff, dim_pad), lambda i, k: (i, 0)),   # x rows
                    pl.BlockSpec((dim_pad, th_eff), lambda i, k: (0, k)),   # W1 chunk
                    pl.BlockSpec((1, th_eff), lambda i, k: (0, k)),         # b1 chunk
                    pl.BlockSpec((th_eff, dim_pad), lambda i, k: (k, 0)),   # W2 chunk
                    pl.BlockSpec((1, dim_pad), lambda i, k: (0, 0)),        # b2
                ],
                out_specs=pl.BlockSpec((tm_eff, dim_pad), lambda i, k: (i, 0)),
                scratch_shapes=[pltpu.VMEM((tm_eff, dim_pad), jnp.float32)],
            ),
            compiler_params=pltpu.CompilerParams(
                dimension_semantics=("parallel", "arbitrary"),
                vmem_limit_bytes=vmem_limit),
            cost_estimate=cost,
        )(x_p, w1_p, b1_p, w2_p, b2_p)

    return out[:n, :dim].astype(x.dtype).reshape(orig_shape)


def prepare_feed_forward_params(w1, b1, w2, b2, *, tm=None, th=None):
    """Pad weights ONCE to the tile-aligned layout (in-jit pads become no-ops)."""
    dim, hidden = w1.shape
    itemsize = jnp.dtype(w1.dtype).itemsize
    cfg = _plan(dim, hidden, itemsize, tm, th)
    dp, ht = cfg["dim_pad"], cfg["hidden_total"]
    w1p = jnp.pad(w1, ((0, dp - dim), (0, ht - hidden)))
    b1p = jnp.pad(jnp.reshape(b1, (1, -1)), ((0, 0), (0, ht - hidden)))
    w2p = jnp.pad(w2, ((0, ht - hidden), (0, dp - dim)))
    b2p = jnp.pad(jnp.reshape(b2, (1, -1)), ((0, 0), (0, dp - dim)))
    return w1p, b1p, w2p, b2p


def init_feed_forward_params(key, dim, hidden_dim, dtype=jnp.float32):
    """Deterministic init mirroring nn.Linear's U(-1/sqrt(fan_in), 1/sqrt(fan_in)).

    Weights are stored as (in_features, out_features) — transposed vs torch.
    """
    k1, k2, k3, k4 = jax.random.split(key, 4)
    bound1 = 1.0 / (dim ** 0.5)
    bound2 = 1.0 / (hidden_dim ** 0.5)
    w1 = jax.random.uniform(k1, (dim, hidden_dim), dtype, -bound1, bound1)
    b1 = jax.random.uniform(k2, (hidden_dim,), dtype, -bound1, bound1)
    w2 = jax.random.uniform(k3, (hidden_dim, dim), dtype, -bound2, bound2)
    b2 = jax.random.uniform(k4, (dim,), dtype, -bound2, bound2)
    return w1, b1, w2, b2


def _reference(x, w1, b1, w2, b2):
    dim = x.shape[-1]
    h = jnp.maximum(x.reshape(-1, dim) @ w1 + b1.reshape(1, -1), 0.0)
    return (h @ w2 + b2.reshape(1, -1)).reshape(x.shape)


if __name__ == "__main__":
    key = jax.random.PRNGKey(0)

    # Case 1: small aligned-ish shapes; weights pre-padded once (single-k path).
    k1, k2, key = jax.random.split(key, 3)
    batch, seq, dim, hidden_dim = 2, 8, 64, 256
    x = jax.random.normal(k1, (batch, seq, dim), jnp.float32)
    raw = init_feed_forward_params(k2, dim, hidden_dim)
    params = prepare_feed_forward_params(*raw)
    y = jax.block_until_ready(feed_forward(x, *params))
    ref = _reference(x, *raw)
    assert y.shape == x.shape
    assert jnp.allclose(y, ref, atol=2e-4, rtol=2e-4)

    # Case 2: ragged shapes exercising N / dim / hidden padding, a multi-tile row
    # grid and the multi-k accumulator path (th=128 forces hidden chunking).
    k3, k4 = jax.random.split(key)
    batch, seq, dim, hidden_dim = 3, 100, 192, 384
    x = jax.random.normal(k3, (batch, seq, dim), jnp.float32)
    raw = init_feed_forward_params(k4, dim, hidden_dim)
    params = prepare_feed_forward_params(*raw, tm=128, th=128)
    y = jax.block_until_ready(feed_forward(x, *params, tm=128, th=128))
    ref = _reference(x, *raw)
    assert y.shape == x.shape
    assert jnp.allclose(y, ref, atol=2e-4, rtol=2e-4)

    print("KERNEL_OK")
</pallas_src>

<mosaic_0001>
module attributes {stable_mosaic.version = 11 : i64} {
  func.func @_ffn_kernel_single(%arg0: i32, %arg1: memref<16x128xf32, #tpu.memory_space<vmem>>, %arg2: memref<128x256xf32, #tpu.memory_space<vmem>>, %arg3: memref<1x256xf32, #tpu.memory_space<vmem>>, %arg4: memref<256x128xf32, #tpu.memory_space<vmem>>, %arg5: memref<1x128xf32, #tpu.memory_space<vmem>>, %arg6: memref<16x128xf32, #tpu.memory_space<vmem>>) attributes {dimension_semantics = [#tpu.dimension_semantics<parallel>], iteration_bounds = array<i64: 1>, scalar_prefetch = 0 : i64, scratch_operands = 0 : i64, tpu.core_type = #tpu.core_type<tc>, window_params = [{transform_indices = @transform_0, window_bounds = array<i64: 16, 128>}, {pipeline_mode = #tpu.pipeline_mode<synchronous>, transform_indices = @transform_1, window_bounds = array<i64: 128, 256>}, {pipeline_mode = #tpu.pipeline_mode<synchronous>, transform_indices = @transform_2, window_bounds = array<i64: 1, 256>}, {pipeline_mode = #tpu.pipeline_mode<synchronous>, transform_indices = @transform_3, window_bounds = array<i64: 256, 128>}, {pipeline_mode = #tpu.pipeline_mode<synchronous>, transform_indices = @transform_4, window_bounds = array<i64: 1, 128>}, {transform_indices = @transform_5, window_bounds = array<i64: 16, 128>}]} {
    %c0 = arith.constant 0 : index
    %c0_0 = arith.constant 0 : index
    %0 = vector.load %arg1[%c0, %c0_0] : memref<16x128xf32, #tpu.memory_space<vmem>>, vector<16x128xf32>
    %c0_1 = arith.constant 0 : index
    %c0_2 = arith.constant 0 : index
    %1 = vector.load %arg2[%c0_1, %c0_2] : memref<128x256xf32, #tpu.memory_space<vmem>>, vector<128x256xf32>
    %cst = arith.constant dense<0.000000e+00> : vector<16x256xf32>
    %2 = tpu.matmul %0, %1, %cst {dimension_numbers = #tpu.dot_dimension_numbers<[1], [0], [0], [1], [0, 0, 1, 1], [], []>} : vector<16x128xf32>, vector<128x256xf32>, vector<16x256xf32> -> vector<16x256xf32>
    %c0_3 = arith.constant 0 : index
    %c0_4 = arith.constant 0 : index
    %3 = vector.load %arg3[%c0_3, %c0_4] : memref<1x256xf32, #tpu.memory_space<vmem>>, vector<1x256xf32>
    %4 = vector.broadcast %3 : vector<1x256xf32> to vector<16x256xf32>
    %5 = arith.addf %2, %4 : vector<16x256xf32>
    %cst_5 = arith.constant 0.000000e+00 : f32
    %6 = vector.broadcast %cst_5 : f32 to vector<16x256xf32>
    %7 = arith.maximumf %5, %6 : vector<16x256xf32>
    %c0_6 = arith.constant 0 : index
    %c0_7 = arith.constant 0 : index
    %8 = vector.load %arg4[%c0_6, %c0_7] : memref<256x128xf32, #tpu.memory_space<vmem>>, vector<256x128xf32>
    %cst_8 = arith.constant dense<0.000000e+00> : vector<16x128xf32>
    %9 = tpu.matmul %7, %8, %cst_8 {dimension_numbers = #tpu.dot_dimension_numbers<[1], [0], [0], [1], [0, 0, 1, 1], [], []>} : vector<16x256xf32>, vector<256x128xf32>, vector<16x128xf32> -> vector<16x128xf32>
    %c0_9 = arith.constant 0 : index
    %c0_10 = arith.constant 0 : index
    %10 = vector.load %arg5[%c0_9, %c0_10] : memref<1x128xf32, #tpu.memory_space<vmem>>, vector<1x128xf32>
    %11 = vector.broadcast %10 : vector<1x128xf32> to vector<16x128xf32>
    %12 = arith.addf %9, %11 : vector<16x128xf32>
    %c0_11 = arith.constant 0 : index
    %c0_12 = arith.constant 0 : index
    %13 = vector.load %arg6[%c0_11, %c0_12] : memref<16x128xf32, #tpu.memory_space<vmem>>, vector<16x128xf32>
    tpu.vector_store %arg6[%c0_11, %c0_12], %12 {strides = array<i32>} : memref<16x128xf32, #tpu.memory_space<vmem>>, vector<16x128xf32>,
    return
  }
  func.func @transform_0(%arg0: i32) -> (i32, i32) {
    %c0_i32 = arith.constant 0 : i32
    %c0_i32_0 = arith.constant 0 : i32
    return %arg0, %c0_i32 : i32, i32
  }
  func.func @transform_1(%arg0: i32) -> (i32, i32) {
    %c0_i32 = arith.constant 0 : i32
    %c0_i32_0 = arith.constant 0 : i32
    %c0_i32_1 = arith.constant 0 : i32
    return %c0_i32, %c0_i32_0 : i32, i32
  }
  func.func @transform_2(%arg0: i32) -> (i32, i32) {
    %c0_i32 = arith.constant 0 : i32
    %c0_i32_0 = arith.constant 0 : i32
    %c0_i32_1 = arith.constant 0 : i32
    return %c0_i32, %c0_i32_0 : i32, i32
  }
  func.func @transform_3(%arg0: i32) -> (i32, i32) {
    %c0_i32 = arith.constant 0 : i32
    %c0_i32_0 = arith.constant 0 : i32
    %c0_i32_1 = arith.constant 0 : i32
    return %c0_i32, %c0_i32_0 : i32, i32
  }
  func.func @transform_4(%arg0: i32) -> (i32, i32) {
    %c0_i32 = arith.constant 0 : i32
    %c0_i32_0 = arith.constant 0 : i32
    %c0_i32_1 = arith.constant 0 : i32
    return %c0_i32, %c0_i32_0 : i32, i32
  }
  func.func @transform_5(%arg0: i32) -> (i32, i32) {
    %c0_i32 = arith.constant 0 : i32
    %c0_i32_0 = arith.constant 0 : i32
    return %arg0, %c0_i32 : i32, i32
  }
}

</mosaic_0001>

<bundles_post_ra>
// kernel: feed_forward.1
= control target key start
LH: loop header
LB: loop body
LE: loop exit
PB: predicated region body
PF: predicated region fallthrough
CT: control target
= control target key end

     0   :  { %10 = vsyncpa [#allocation3], 0  ;;  %s536_s0 = inlined_call_operand.vmem [shape: f32[16,128], index: 0, kind: input, shape index: {}]   ;;  %s537_s1 = inlined_call_operand.hbm [shape: f32[128,256], index: 1, kind: input, shape index: {}]   ;;  %s538_s2 = inlined_call_operand.vmem [shape: f32[1,256], index: 2, kind: input, shape index: {}]   ;;  %s539_s3 = inlined_call_operand.hbm [shape: f32[256,128], index: 3, kind: input, shape index: {}]   ;;  %s540_s4 = inlined_call_operand.vmem [shape: f32[1,128], index: 4, kind: input, shape index: {}]   ;;  %s541_s5 = inlined_call_operand.vmem [shape: f32[16,128], index: 5, kind: output, shape index: {}]  }
   0x1   :  { %11 = vsyncpa [#allocation5], 0  ;;  %s455_s18 = smov [#allocation2]   ;;  %s407_s22 = scalar_lea.hbm %s537_s1, 4096 }
   0x2   :  { %s19_s19 = sshll.u32 %s455_s18, 4  ;;  %p408_p0 = scmp.ne.s32.totalorder %s537_s1, %s407_s22  ;;  %s20_s19 = int_to_ptr.vmem [resolvable:$true] %s19_s19 }
   0x3   :  { %p411_p1 = scmp.lt.u32.totalorder %s407_s22, %s537_s1 }
   0x5   :  { %p413_p2 = pnand %p411_p1, %p408_p0 }
   0x7   :  { %416 = shalt.err (!%p413_p2)
}
   0x8   :  { %s417_s27 = scalar_lea.vmem %s20_s19, 4096  ;;  %p422_p4 = scmp.lt.s32.totalorder %s20_s19, %s20_s19 }
   0x9   :  { %p418_p3 = scmp.ne.s32.totalorder %s20_s19, %s417_s27  ;;  %p423_p5 = scmp.lt.s32.totalorder %s417_s27, %s417_s27 }
   0xb   :  { %p424_p6 = por %p423_p5, %p422_p4 }
   0xd   :  { %p425_p7 = pnand %p424_p6, %p418_p3 }
   0xf   :  { %428 = shalt.err (!%p425_p7)
}
  0x10   :  { %s456_s28 = smov 256   ;;  %s457_s29 = smov 16  }
  0x11   :  { %25 = dma.hbm_to_vmem [thread:$0]  %s537_s1, 4096, %s20_s19, [#allocation3], %s456_s28, %s456_s28, %s457_s29  }
  0x12   :  { %s458_s7 = smov [#allocation4]   ;;  %s429_s11 = scalar_lea.hbm %s539_s3, 4096 }
  0x13   :  { %s33_s8 = sshll.u32 %s458_s7, 4  ;;  %p430_p8 = scmp.ne.s32.totalorder %s539_s3, %s429_s11  ;;  %s34_s8 = int_to_ptr.vmem [resolvable:$true] %s33_s8 }
  0x14   :  { %p433_p9 = scmp.lt.u32.totalorder %s429_s11, %s539_s3 }
  0x16   :  { %p435_p10 = pnand %p433_p9, %p430_p8 }
  0x18   :  { %438 = shalt.err (!%p435_p10)
}
  0x19   :  { %s439_s16 = scalar_lea.vmem %s34_s8, 4096  ;;  %p444_p12 = scmp.lt.s32.totalorder %s34_s8, %s34_s8 }
  0x1a   :  { %p440_p11 = scmp.ne.s32.totalorder %s34_s8, %s439_s16  ;;  %p445_p13 = scmp.lt.s32.totalorder %s439_s16, %s439_s16 }
  0x1c   :  { %p446_p0 = por %p445_p13, %p444_p12 }
  0x1e   :  { %p447_p1 = pnand %p446_p0, %p440_p11 }
  0x20   :  { %450 = shalt.err (!%p447_p1)
}
  0x21   :  { %s459_s1 = smov 128   ;;  %s460_s17 = smov 8  }
  0x22   :  { %39 = dma.hbm_to_vmem [thread:$0]  %s539_s3, 4096, %s34_s8, [#allocation5], %s459_s1, %s459_s1, %s460_s17  }
  0x23   :  { %451 = dma.done.wait [#allocation3], 4096  }
  0x24   :  { %452 = vsyncadd [#allocation3], 4294963200 }
  0x25   :  { %453 = dma.done.wait [#allocation5], 4096  }
  0x26   :  { %454 = vsyncadd [#allocation5], 4294963200  ;;  %v461_v0 = vmov 0.0   ;;  %v51_v1 = vld [vmem:[#allocation2 + $0x8] sm:$0xff]  ;;  %v53_v2 = vld [vmem:[#allocation2 + $0x18] sm:$0xff] }
  0x27   :  { %158 = vmatprep.mubr.f32.mxu0 %v461_v0  ;;  %v50_v3 = vld [vmem:[#allocation2] sm:$0xff]  ;;  %v336_v4 = vpack.c.bf16 %v53_v2, %v51_v1  ;;  %v52_v5 = vld [vmem:[#allocation2 + $0x10] sm:$0xff]  ;;  %v55_v6 = vld [vmem:[#allocation2 + $0x28] sm:$0xff] }
  0x28   :  { %v57_v7 = vld [vmem:[#allocation2 + $0x38] sm:$0xff]  ;;  %v338_v8 = vpack.c.bf16 %v52_v5, %v50_v3  ;;  %v54_v10 = vld [vmem:[#allocation2 + $0x20] sm:$0xff]  ;;  %v56_v11 = vld [vmem:[#allocation2 + $0x30] sm:$0xff] }
  0x29   :  { %v340_v9 = vpack.c.bf16 %v57_v7, %v55_v6  ;;  %v59_v12 = vld [vmem:[#allocation2 + $0x48] sm:$0xff]  ;;  %337 = vmatprep.subr.bf16.mxu0 %v336_v4  ;;  %v61_v13 = vld [vmem:[#allocation2 + $0x58] sm:$0xff]  ;;  %v342_v14 = vpack.c.bf16 %v56_v11, %v54_v10  ;;  %v58_v16 = vld [vmem:[#allocation2 + $0x40] sm:$0xff] }
  0x2a   :  { %339 = vmatpush1.bf16.msra.mxu0 %v338_v8  ;;  %v344_v15 = vpack.c.bf16 %v61_v13, %v59_v12  ;;  %v60_v17 = vld [vmem:[#allocation2 + $0x50] sm:$0xff]  ;;  %v63_v18 = vld [vmem:[#allocation2 + $0x68] sm:$0xff]  ;;  %v65_v19 = vld [vmem:[#allocation2 + $0x78] sm:$0xff] }
  0x2b   :  { %341 = vmatprep.subr.bf16.mxu0 %v340_v9  ;;  %v346_v20 = vpack.c.bf16 %v60_v17, %v58_v16  ;;  %v348_v21 = vpack.c.bf16 %v65_v19, %v63_v18  ;;  %v62_v22 = vld [vmem:[#allocation2 + $0x60] sm:$0xff]  ;;  %v64_v23 = vld [vmem:[#allocation2 + $0x70] sm:$0xff]  ;;  %v67_v24 = vld [vmem:[#allocation2 + $0x88] sm:$0xff] }
  0x2c   :  { %v69_v25 = vld [vmem:[#allocation2 + $0x98] sm:$0xff]  ;;  %v66_v26 = vld [vmem:[#allocation2 + $0x80] sm:$0xff]  ;;  %v68_v27 = vld [vmem:[#allocation2 + $0x90] sm:$0xff]  ;;  %v350_v30 = vpack.c.bf16 %v64_v23, %v62_v22 }
  0x2d   :  { %v191_v28 = vld [vmem:[#allocation4 + $0x80] sm:$0xff]  ;;  %v192_v29 = vld [vmem:[#allocation4 + $0x88] sm:$0xff]  ;;  %v193_v35 = vld [vmem:[#allocation4 + $0x90] sm:$0xff]  ;;  %v352_v36 = vpack.c.bf16 %v69_v25, %v67_v24  ;;  %v354_v46 = vpack.c.bf16 %v68_v27, %v66_v26 }
  0x2e   :  { %343 = vmatpush1.bf16.msra.mxu0 %v342_v14  ;;  %v71_v31 = vld [vmem:[#allocation2 + $0xa8] sm:$0xff]  ;;  %v368_v32 = vpack.c.bf16 %v192_v29, %v191_v28  ;;  %v175_v33 = vld [vmem:[#allocation4] sm:$0xff]  ;;  %v194_v38 = vld [vmem:[#allocation4 + $0x98] sm:$0xff] }
  0x2f   :  { %345 = vmatprep.subr.bf16.mxu0 %v344_v15  ;;  %v176_v34 = vld [vmem:[#allocation4 + $0x8] sm:$0xff]  ;;  %v177_v39 = vld [vmem:[#allocation4 + $0x10] sm:$0xff]  ;;  %v178_v40 = vld [vmem:[#allocation4 + $0x18] sm:$0xff]  ;;  %v372_v42 = vpack.c.bf16 %v194_v38, %v193_v35 }
  0x30   :  { %v370_v37 = vpack.c.bf16 %v176_v34, %v175_v33  ;;  %v73_v41 = vld [vmem:[#allocation2 + $0xb8] sm:$0xff]  ;;  %369 = vmatprep.subr.bf16.mxu1 %v368_v32  ;;  %v195_v43 = vld [vmem:[#allocation4 + $0xa0] sm:$0xff]  ;;  %v196_v44 = vld [vmem:[#allocation4 + $0xa8] sm:$0xff]  ;;  %v374_v45 = vpack.c.bf16 %v178_v40, %v177_v39 }
  0x31   :  { %v70_v47 = vld [vmem:[#allocation2 + $0xa0] sm:$0xff]  ;;  %v376_v48 = vpack.c.bf16 %v196_v44, %v195_v43  ;;  %v180_v50 = vld [vmem:[#allocation4 + $0x28] sm:$0xff]  ;;  %v356_v51 = vpack.c.bf16 %v73_v41, %v71_v31  ;;  %v72_v52 = vld [vmem:[#allocation2 + $0xb0] sm:$0xff] }
  0x32   :  { %347 = vmatpush1.bf16.msra.mxu0 %v346_v20  ;;  %371 = vmatpush3.bf16.msra.mxu1 %v370_v37  ;;  %v179_v49 = vld [vmem:[#allocation4 + $0x20] sm:$0xff]  ;;  %v197_v53 = vld [vmem:[#allocation4 + $0xb0] sm:$0xff]  ;;  %v198_v54 = vld [vmem:[#allocation4 + $0xb8] sm:$0xff]  ;;  %v358_v58 = vpack.c.bf16 %v72_v52, %v70_v47 }
  0x33   :  { %349 = vmatprep.subr.bf16.mxu0 %v348_v21  ;;  %373 = vmatprep.subr.bf16.mxu1 %v372_v42  ;;  %v75_v55 = vld [vmem:[#allocation2 + $0xc8] sm:$0xff]  ;;  %v77_v56 = vld [vmem:[#allocation2 + $0xd8] sm:$0xff]  ;;  %v378_v57 = vpack.c.bf16 %v180_v50, %v179_v49  ;;  %v74_v59 = vld [vmem:[#allocation2 + $0xc0] sm:$0xff]  ;;  %v380_v60 = vpack.c.bf16 %v198_v54, %v197_v53 }
  0x34   :  { %v181_v61 = vld [vmem:[#allocation4 + $0x30] sm:$0xff]  ;;  %v182_v62 = vld [vmem:[#allocation4 + $0x38] sm:$0xff]  ;;  %v360_v63 = vpack.c.bf16 %v77_v56, %v75_v55  ;;  %v199_v2 = vld [vmem:[#allocation4 + $0xc0] sm:$0xff] }
  0x35   :  { %v76_v1 = vld [vmem:[#allocation2 + $0xd0] sm:$0xff]  ;;  %v200_v3 = vld [vmem:[#allocation4 + $0xc8] sm:$0xff]  ;;  %v81_v5 = vld [vmem:[#allocation2 + $0xf8] sm:$0xff]  ;;  %v382_v6 = vpack.c.bf16 %v182_v62, %v181_v61 }
  0x36   :  { %351 = vmatpush1.bf16.msra.mxu0 %v350_v30  ;;  %375 = vmatpush3.bf16.msra.mxu1 %v374_v45  ;;  %v79_v4 = vld [vmem:[#allocation2 + $0xe8] sm:$0xff]  ;;  %v362_v7 = vpack.c.bf16 %v76_v1, %v74_v59  ;;  %v78_v8 = vld [vmem:[#allocation2 + $0xe0] sm:$0xff]  ;;  %v384_v9 = vpack.c.bf16 %v200_v3, %v199_v2  ;;  %v80_v13 = vld [vmem:[#allocation2 + $0xf0] sm:$0xff] }
  0x37   :  { %353 = vmatprep.subr.bf16.mxu0 %v352_v36  ;;  %377 = vmatprep.subr.bf16.mxu1 %v376_v48  ;;  %v183_v10 = vld [vmem:[#allocation4 + $0x40] sm:$0xff]  ;;  %v184_v11 = vld [vmem:[#allocation4 + $0x48] sm:$0xff]  ;;  %v364_v12 = vpack.c.bf16 %v81_v5, %v79_v4  ;;  %v201_v14 = vld [vmem:[#allocation4 + $0xd0] sm:$0xff]  ;;  %v366_v17 = vpack.c.bf16 %v80_v13, %v78_v8  ;;  %v84_v36 = vlaneseq }
  0x38   :  { %v202_v15 = vld [vmem:[#allocation4 + $0xd8] sm:$0xff]  ;;  %v386_v16 = vpack.c.bf16 %v184_v11, %v183_v10  ;;  %v185_v19 = vld [vmem:[#allocation4 + $0x50] sm:$0xff]  ;;  %v203_v21 = vld [vmem:[#allocation4 + $0xe0] sm:$0xff] }
  0x39   :  { %v388_v18 = vpack.c.bf16 %v202_v15, %v201_v14  ;;  %v186_v20 = vld [vmem:[#allocation4 + $0x58] sm:$0xff]  ;;  %v204_v22 = vld [vmem:[#allocation4 + $0xe8] sm:$0xff]  ;;  %v48_v24 = vld [vmem:[%s536_s0] sm:$0xff] }
  0x3a   :  { %355 = vmatpush1.bf16.msra.mxu0 %v354_v46  ;;  %379 = vmatpush3.bf16.msra.mxu1 %v378_v57  ;;  %v390_v23 = vpack.c.bf16 %v186_v20, %v185_v19  ;;  %v392_v25 = vpack.c.bf16 %v204_v22, %v203_v21  ;;  %v49_v26 = vld [vmem:[%s536_s0 + $0x8] sm:$0xff]  ;;  %v187_v27 = vld [vmem:[#allocation4 + $0x60] sm:$0xff]  ;;  %v205_v30 = vld [vmem:[#allocation4 + $0xf0] sm:$0xff] }
  0x3b   :  { %357 = vmatprep.subr.bf16.mxu0 %v356_v51  ;;  %381 = vmatprep.subr.bf16.mxu1 %v380_v60  ;;  %v188_v28 = vld [vmem:[#allocation4 + $0x68] sm:$0xff]  ;;  %v206_v31 = vld [vmem:[#allocation4 + $0xf8] sm:$0xff]  ;;  %v189_v33 = vld [vmem:[#allocation4 + $0x70] sm:$0xff] }
  0x3c   :  { %v394_v29 = vpack.c.bf16 %v188_v28, %v187_v27  ;;  %v396_v32 = vpack.c.bf16 %v206_v31, %v205_v30  ;;  %v190_v34 = vld [vmem:[#allocation4 + $0x78] sm:$0xff]  ;;  %v82_v38 = vld [vmem:[%s538_s2] sm:$0x3] }
  0x3d   :  { %v398_v35 = vpack.c.bf16 %v190_v34, %v189_v33  ;;  %v297_v55 = vld [vmem:[%s540_s4] ss:$0 sm:$0xff] }
  0x3e   :  { %359 = vmatpush1.bf16.msra.mxu0 %v358_v58  ;;  %383 = vmatpush3.bf16.msra.mxu1 %v382_v6 }
  0x3f   :  { %361 = vmatprep.subr.bf16.mxu0 %v360_v63  ;;  %385 = vmatprep.subr.bf16.mxu1 %v384_v9 }
  0x42   :  { %363 = vmatpush1.bf16.msra.mxu0 %v362_v7  ;;  %387 = vmatpush3.bf16.msra.mxu1 %v386_v16 }
  0x43   :  { %365 = vmatprep.subr.bf16.mxu0 %v364_v12  ;;  %389 = vmatprep.subr.bf16.mxu1 %v388_v18 }
  0x46   :  { %367 = vmatpush1.bf16.msra.mxu0 %v366_v17  ;;  %391 = vmatpush3.bf16.msra.mxu1 %v390_v23 }
  0x47   :  { %393 = vmatprep.subr.bf16.mxu1 %v392_v25 }
  0x49   :  { %159 = vmatmul.mubr.f32.vlgmr.msra.gmra.mrb[0].mxu0 %v48_v24 }
  0x4a   :  { %164 = vmatprep.mubr.f32.mxu0 %v461_v0  ;;  %395 = vmatpush3.bf16.msra.mxu1 %v394_v29  ;;  %v85_v0 = vshrl.u32 %v84_v36, 7 }
  0x4b   :  { %397 = vmatprep.subr.bf16.mxu1 %v396_v32 }
  0x4c   :  { %v86_v37 = vsub.s32 0, %v85_v0  ;;  %v90_v39 = vsub.s32 1, %v85_v0 }
  0x4d   :  { %165 = vmatmul.mubr.f32.gmra.mrb[2].mxu0 %v49_v26 }
  0x4e   :  { %399 = vmatpush3.bf16.msra.mxu1 %v398_v35  ;;  %v87_v40 = vrot.slane %v82_v38, %v86_v37  ;;  %v91_v41 = vrot.slane %v82_v38, %v90_v39 }
 0x11c   :  { %v160_v42 = vpop.f32.mrb[0].mxu0 }
 0x11d   :  { %v161_v43 = vadd.f32 %v160_v42, %v87_v40  ;;  %v162_v44 = vpop.f32.mrb[1].mxu0 }
 0x11e   :  { %v163_v45 = vadd.f32 %v162_v44, %v91_v41 }
 0x11f   :  { %v171_v48 = vmax.f32 %v161_v43, 0.0 }
 0x120   :  { %v166_v46 = vpop.f32.mrb[2].mxu0  ;;  %v172_v47 = vmax.f32 %v163_v45, 0.0 }
 0x121   :  { %v167_v49 = vadd.f32 %v166_v46, %v87_v40  ;;  %v168_v50 = vpop.f32.mrb[3].mxu0 }
 0x122   :  { %v169_v51 = vadd.f32 %v168_v50, %v91_v41  ;;  %278 = vmatprep.mubr.f32.mxu1 %v172_v47 }
 0x123   :  { %279 = vmatmul.mubr.f32.vlgmr.msra.gmra.mrb[0].mxu1 %v171_v48  ;;  %v173_v53 = vmax.f32 %v167_v49, 0.0 }
 0x124   :  { %v174_v52 = vmax.f32 %v169_v51, 0.0 }
 0x126   :  { %283 = vmatprep.mubr.f32.mxu1 %v174_v52 }
 0x127   :  { %284 = vmatmul.mubr.f32.gmra.mrb[2].mxu1 %v173_v53 }
 0x1f6   :  { %v330_v54 = vpop.f32.mrb[0].mxu1 }
 0x1f7   :  { %v331_v56 = vpop.f32.mrb[1].mxu1 }
 0x1f8   :  { %v332_v57 = vadd.f32 %v331_v56, %v330_v54 }
 0x1fa   :  { %v281_v58 = vadd.f32 %v332_v57, %v297_v55  ;;  %v333_v59 = vpop.f32.mrb[2].mxu1 }
 0x1fb   :  { %v334_v60 = vpop.f32.mrb[3].mxu1 }
 0x1fc   :  { %289 = vst [vmem:[%s541_s5] sm:$0xff] %v281_v58  ;;  %v335_v61 = vadd.f32 %v334_v60, %v333_v59 }
 0x1fe   :  { %v286_v62 = vadd.f32 %v335_v61, %v297_v55 }
 0x200   :  { %290 = vst [vmem:[%s541_s5 + $0x8] sm:$0xff] %v286_v62 }
 0x201   :  { %295 = vsyncpa [#allocation3], 1 }
 0x202   :  { %296 = vsyncpa [#allocation5], 1 }

</bundles_post_ra>
